<compile_context>
chip_gen: v7x
topology: tpu7x:2x2x1
jax: 0.10.0
libtpu: 0.0.40
codegen_flags: <defaults>
</compile_context>

<pallas_src>
import functools

import jax
import jax.numpy as jnp
from jax import lax
from jax.experimental import pallas as pl
from jax.experimental.pallas import tpu as pltpu


def _channel_attn_kernel(x_ref, w1a_ref, w1b_ref, w2_ref, lamb_ref, o_ref, *, hw_real):
    x = x_ref[...]                                   # (Bt, C, HWp) f32

    # --- one-pass per-channel statistics (zero pad does not perturb sums) ---
    n = jnp.float32(hw_real)
    s = jnp.sum(x, axis=-1)                          # (Bt, C)
    ss = jnp.sum(x * x, axis=-1)                     # (Bt, C)
    mean = s / n
    # unbiased variance (torch.std default), clamped against cancellation
    var = jnp.maximum(ss - s * mean, 0.0) / (n - 1.0)
    std = jnp.sqrt(var)                              # (Bt, C)

    # --- tiny MLP, batched over Bt, channels on lanes ---
    # torch.cat((mean, std), 1) is folded into two static slices of w1 that the
    # wrapper passes as separate arrays:  h = mean @ w1a.T + std @ w1b.T
    cdn = (((1,), (1,)), ((), ()))                   # contract last dims
    h = lax.dot_general(mean, w1a_ref[...], cdn, preferred_element_type=jnp.float32)
    h = h + lax.dot_general(std, w1b_ref[...], cdn, preferred_element_type=jnp.float32)
    h = jnp.maximum(h, 0.0)                          # (Bt, C//8)
    attn = jax.nn.sigmoid(
        lax.dot_general(h, w2_ref[...], cdn, preferred_element_type=jnp.float32)
    )                                                # (Bt, C)

    lamb = lamb_ref[0]
    o_ref[...] = (lamb * attn)[:, :, None] * x       # broadcast over spatial


def _pick_batch_tile(B, per_batch_bytes, target_bytes=4 << 20):
    """Largest divisor of B whose block fits the target, preferring >=2 grid steps."""
    divisors = [d for d in range(1, B + 1) if B % d == 0]
    fitting = [d for d in divisors if d * per_batch_bytes <= target_bytes] or [1]
    bt = max(fitting)
    if B // bt < 2:  # keep both v7x TensorCores busy when B allows it
        smaller = [d for d in fitting if B // d >= 2]
        if smaller:
            bt = max(smaller)
    return bt


def channel_attn(x, w1, w2, lamb):
    """x: (B, C, H, W) f32. w1: (C//8, 2C), w2: (C, C//8) torch Linear layout. lamb: (1,)."""
    B, C, H, W = x.shape
    HW = H * W
    assert HW > 1, "unbiased std needs at least 2 spatial elements"
    Cr = w1.shape[0]

    # lane-dense spatial axis: pad HW up to a multiple of 128
    HWp = ((HW + 127) // 128) * 128
    x2 = x.reshape(B, C, HW)
    if HWp != HW:
        x2 = jnp.pad(x2, ((0, 0), (0, 0), (0, HWp - HW)))

    # pre-split w1 so the kernel never concatenates (mean, std)
    w1a = w1[:, :C]
    w1b = w1[:, C:]

    per_batch_bytes = C * HWp * 4
    Bt = _pick_batch_tile(B, per_batch_bytes)
    block_bytes = Bt * per_batch_bytes
    grid = (B // Bt,)

    # input + output are each double-buffered -> ~4x block, plus temporaries
    vmem_limit = int(min(64 << 20, max(32 << 20, 8 * block_bytes + (2 << 20))))

    cost = pl.CostEstimate(
        flops=int(5 * B * C * HW + 2 * B * (2 * C * Cr + Cr * C)),
        transcendentals=int(2 * B * C),
        bytes_accessed=int(4 * (2 * B * C * HWp + w1.size + w2.size)),
    )

    out = pl.pallas_call(
        functools.partial(_channel_attn_kernel, hw_real=HW),
        out_shape=jax.ShapeDtypeStruct((B, C, HWp), x.dtype),
        grid=grid,
        in_specs=[
            pl.BlockSpec((Bt, C, HWp), lambda b: (b, 0, 0)),
            pl.BlockSpec(w1a.shape, lambda b: (0, 0)),
            pl.BlockSpec(w1b.shape, lambda b: (0, 0)),
            pl.BlockSpec(w2.shape, lambda b: (0, 0)),
            pl.BlockSpec(memory_space=pltpu.SMEM),
        ],
        out_specs=pl.BlockSpec((Bt, C, HWp), lambda b: (b, 0, 0)),
        compiler_params=pltpu.CompilerParams(
            dimension_semantics=("parallel",),
            vmem_limit_bytes=vmem_limit,
        ),
        cost_estimate=cost,
    )(x2, w1a, w1b, w2, lamb)

    if HWp != HW:
        out = out[:, :, :HW]
    return out.reshape(B, C, H, W)


def channel_attn_ref(x, w1, w2, lamb):
    """Pure-JAX reference matching the PyTorch forward exactly."""
    B, C, H, W = x.shape
    new = x.reshape(B, C, -1)
    mean = jnp.mean(new, axis=-1)
    std = jnp.std(new, axis=-1, ddof=1)            # torch.std is unbiased
    feat = jnp.concatenate([mean, std], axis=1)    # (B, 2C)
    h = jnp.maximum(feat @ w1.T, 0.0)
    attn = jax.nn.sigmoid(h @ w2.T)                # (B, C)
    return lamb[0] * attn[:, :, None, None] * x


if __name__ == "__main__":
    key = jax.random.PRNGKey(0)
    k_x, k_w1, k_w2 = jax.random.split(key, 3)

    # in_dim (channels) must be >= 8 for the reduction=8 bottleneck -> C=16.
    B, C, H, W = 2, 16, 16, 16
    Cr = C // 8

    x = jax.random.normal(k_x, (B, C, H, W), dtype=jnp.float32)
    # torch Linear layout: (out_features, in_features), no bias.
    w1 = 0.1 * jax.random.normal(k_w1, (Cr, 2 * C), dtype=jnp.float32)
    w2 = 0.1 * jax.random.normal(k_w2, (C, Cr), dtype=jnp.float32)
    lamb = jnp.ones((1,), dtype=jnp.float32)       # nn.Parameter(torch.ones(1))

    out = jax.block_until_ready(channel_attn(x, w1, w2, lamb))
    ref = jax.block_until_ready(channel_attn_ref(x, w1, w2, lamb))

    assert out.shape == x.shape and out.dtype == x.dtype
    assert jnp.allclose(out, ref, atol=1e-5, rtol=1e-5), "mismatch vs reference"
    print("KERNEL_OK")
</pallas_src>

<mosaic_0001>
module attributes {stable_mosaic.version = 11 : i64} {
  func.func @_channel_attn_kernel(%arg0: i32, %arg1: memref<1x16x256xf32, #tpu.memory_space<vmem>>, %arg2: memref<2x16xf32, #tpu.memory_space<vmem>>, %arg3: memref<2x16xf32, #tpu.memory_space<vmem>>, %arg4: memref<16x2xf32, #tpu.memory_space<vmem>>, %arg5: memref<1xf32, #tpu.memory_space<smem>>, %arg6: memref<1x16x256xf32, #tpu.memory_space<vmem>>) attributes {dimension_semantics = [#tpu.dimension_semantics<parallel>], iteration_bounds = array<i64: 2>, scalar_prefetch = 0 : i64, scratch_operands = 0 : i64, tpu.core_type = #tpu.core_type<tc>, window_params = [{transform_indices = @transform_0, window_bounds = array<i64: 1, 16, 256>}, {pipeline_mode = #tpu.pipeline_mode<synchronous>, transform_indices = @transform_1, window_bounds = array<i64: 2, 16>}, {pipeline_mode = #tpu.pipeline_mode<synchronous>, transform_indices = @transform_2, window_bounds = array<i64: 2, 16>}, {pipeline_mode = #tpu.pipeline_mode<synchronous>, transform_indices = @transform_3, window_bounds = array<i64: 16, 2>}, {transform_indices = @transform_4, window_bounds = array<i64: 1>}, {transform_indices = @transform_5, window_bounds = array<i64: 1, 16, 256>}]} {
    %c0 = arith.constant 0 : index
    %c0_0 = arith.constant 0 : index
    %c0_1 = arith.constant 0 : index
    %0 = vector.load %arg1[%c0, %c0_0, %c0_1] : memref<1x16x256xf32, #tpu.memory_space<vmem>>, vector<1x16x256xf32>
    %cst = arith.constant dense<0.000000e+00> : vector<1x16xf32>
    %1 = vector.multi_reduction <add>, %0, %cst [2] : vector<1x16x256xf32> to vector<1x16xf32>
    %2 = arith.mulf %0, %0 : vector<1x16x256xf32>
    %cst_2 = arith.constant dense<0.000000e+00> : vector<1x16xf32>
    %3 = vector.multi_reduction <add>, %2, %cst_2 [2] : vector<1x16x256xf32> to vector<1x16xf32>
    %cst_3 = arith.constant 2.560000e+02 : f32
    %4 = vector.broadcast %cst_3 : f32 to vector<1x16xf32>
    %5 = arith.divf %1, %4 : vector<1x16xf32>
    %6 = arith.mulf %1, %5 : vector<1x16xf32>
    %7 = arith.subf %3, %6 : vector<1x16xf32>
    %cst_4 = arith.constant 0.000000e+00 : f32
    %8 = vector.broadcast %cst_4 : f32 to vector<1x16xf32>
    %9 = arith.maximumf %7, %8 : vector<1x16xf32>
    %cst_5 = arith.constant 2.560000e+02 : f32
    %cst_6 = arith.constant 1.000000e+00 : f32
    %10 = arith.subf %cst_5, %cst_6 : f32
    %11 = vector.broadcast %10 : f32 to vector<1x16xf32>
    %12 = arith.divf %9, %11 : vector<1x16xf32>
    %13 = math.sqrt %12 : vector<1x16xf32>
    %c0_7 = arith.constant 0 : index
    %c0_8 = arith.constant 0 : index
    %14 = vector.load %arg2[%c0_7, %c0_8] : memref<2x16xf32, #tpu.memory_space<vmem>>, vector<2x16xf32>
    %cst_9 = arith.constant dense<0.000000e+00> : vector<1x2xf32>
    %15 = tpu.matmul %5, %14, %cst_9 {dimension_numbers = #tpu.dot_dimension_numbers<[1], [1], [0], [0], [0, 0, 1, 0], [], []>} : vector<1x16xf32>, vector<2x16xf32>, vector<1x2xf32> -> vector<1x2xf32>
    %c0_10 = arith.constant 0 : index
    %c0_11 = arith.constant 0 : index
    %16 = vector.load %arg3[%c0_10, %c0_11] : memref<2x16xf32, #tpu.memory_space<vmem>>, vector<2x16xf32>
    %cst_12 = arith.constant dense<0.000000e+00> : vector<1x2xf32>
    %17 = tpu.matmul %13, %16, %cst_12 {dimension_numbers = #tpu.dot_dimension_numbers<[1], [1], [0], [0], [0, 0, 1, 0], [], []>} : vector<1x16xf32>, vector<2x16xf32>, vector<1x2xf32> -> vector<1x2xf32>
    %18 = arith.addf %15, %17 : vector<1x2xf32>
    %cst_13 = arith.constant 0.000000e+00 : f32
    %19 = vector.broadcast %cst_13 : f32 to vector<1x2xf32>
    %20 = arith.maximumf %18, %19 : vector<1x2xf32>
    %c0_14 = arith.constant 0 : index
    %c0_15 = arith.constant 0 : index
    %21 = vector.load %arg4[%c0_14, %c0_15] : memref<16x2xf32, #tpu.memory_space<vmem>>, vector<16x2xf32>
    %cst_16 = arith.constant dense<0.000000e+00> : vector<1x16xf32>
    %22 = tpu.matmul %20, %21, %cst_16 {dimension_numbers = #tpu.dot_dimension_numbers<[1], [1], [0], [0], [0, 0, 1, 0], [], []>} : vector<1x2xf32>, vector<16x2xf32>, vector<1x16xf32> -> vector<1x16xf32>
    %23 = arith.negf %22 : vector<1x16xf32>
    %24 = math.exp %23 : vector<1x16xf32>
    %cst_17 = arith.constant 1.000000e+00 : f32
    %25 = vector.broadcast %cst_17 : f32 to vector<1x16xf32>
    %26 = arith.addf %25, %24 : vector<1x16xf32>
    %27 = arith.divf %25, %26 : vector<1x16xf32>
    %c0_18 = arith.constant 0 : index
    %28 = memref.load %arg5[%c0_18] : memref<1xf32, #tpu.memory_space<smem>>
    %29 = vector.broadcast %28 : f32 to vector<1x16xf32>
    %30 = arith.mulf %29, %27 : vector<1x16xf32>
    %31 = vector.shape_cast %30 : vector<1x16xf32> to vector<1x16x1xf32>
    %32 = vector.broadcast %31 : vector<1x16x1xf32> to vector<1x16x256xf32>
    %33 = arith.mulf %32, %0 : vector<1x16x256xf32>
    %c0_19 = arith.constant 0 : index
    %c0_20 = arith.constant 0 : index
    %c0_21 = arith.constant 0 : index
    %34 = vector.load %arg6[%c0_19, %c0_20, %c0_21] : memref<1x16x256xf32, #tpu.memory_space<vmem>>, vector<1x16x256xf32>
    tpu.vector_store %arg6[%c0_19, %c0_20, %c0_21], %33 {strides = array<i32>} : memref<1x16x256xf32, #tpu.memory_space<vmem>>, vector<1x16x256xf32>,
    return
  }
  func.func @transform_0(%arg0: i32) -> (i32, i32, i32) {
    %c0_i32 = arith.constant 0 : i32
    %c0_i32_0 = arith.constant 0 : i32
    %c0_i32_1 = arith.constant 0 : i32
    return %arg0, %c0_i32, %c0_i32_0 : i32, i32, i32
  }
  func.func @transform_1(%arg0: i32) -> (i32, i32) {
    %c0_i32 = arith.constant 0 : i32
    %c0_i32_0 = arith.constant 0 : i32
    %c0_i32_1 = arith.constant 0 : i32
    return %c0_i32, %c0_i32_0 : i32, i32
  }
  func.func @transform_2(%arg0: i32) -> (i32, i32) {
    %c0_i32 = arith.constant 0 : i32
    %c0_i32_0 = arith.constant 0 : i32
    %c0_i32_1 = arith.constant 0 : i32
    return %c0_i32, %c0_i32_0 : i32, i32
  }
  func.func @transform_3(%arg0: i32) -> (i32, i32) {
    %c0_i32 = arith.constant 0 : i32
    %c0_i32_0 = arith.constant 0 : i32
    %c0_i32_1 = arith.constant 0 : i32
    return %c0_i32, %c0_i32_0 : i32, i32
  }
  func.func @transform_4(%arg0: i32) -> i32 {
    %c0_i32 = arith.constant 0 : i32
    %c0_i32_0 = arith.constant 0 : i32
    return %c0_i32 : i32
  }
  func.func @transform_5(%arg0: i32) -> (i32, i32, i32) {
    %c0_i32 = arith.constant 0 : i32
    %c0_i32_0 = arith.constant 0 : i32
    %c0_i32_1 = arith.constant 0 : i32
    return %arg0, %c0_i32, %c0_i32_0 : i32, i32, i32
  }
}

</mosaic_0001>

<bundles_post_ra>
// kernel: tpu_custom_call.1
= control target key start
LH: loop header
LB: loop body
LE: loop exit
PB: predicated region body
PF: predicated region fallthrough
CT: control target
= control target key end

     0   :  { %s1134_s0 = inlined_call_operand.hbm [shape: f32[2,16,256], index: 0, kind: input, shape index: {}]   ;;  %s1135_s1 = inlined_call_operand.vmem [shape: f32[2,16], index: 1, kind: input, shape index: {}]   ;;  %s1136_s2 = inlined_call_operand.vmem [shape: f32[2,16], index: 2, kind: input, shape index: {}]   ;;  %s1137_s3 = inlined_call_operand.vmem [shape: f32[16,2], index: 3, kind: input, shape index: {}]   ;;  %s1138_s4 = inlined_call_operand.<no memory space> [shape: f32[1], index: 4, kind: input, shape index: {}]   ;;  %s1139_s5 = inlined_call_operand.hbm [shape: f32[2,16,256], index: 5, kind: output, shape index: {}]  }
   0x1   :  { %10 = sst [smem:[#allocation2]] %s1138_s4 }
   0x2   :  { %11 = vsyncpa [#allocation4], 0 }
   0x3   :  { %13 = vsyncpa [#allocation4 + $0x1], 0 }
   0x4   :  { %14 = vsyncpa [#allocation5], 0 }
   0x5   :  { %16 = vsyncpa [#allocation5 + $0x1], 0  ;;  %s922_s20 = smov 0   ;;  %s924_s21 = smov 0  }
   0x6   :  { %s926_s22 = smov 0   ;;  %s928_s23 = smov 0  }
   0x7 LB: > { %s943_s4 = sadd.s32 4294967295, %s878_s23   ;;  %s667_s24 = sadd.s32 4294967294, %s878_s23   ;;  %s878_s23 = sphi %s928_s23, %s1152_s23   ;;  %s874_s22 = sphi %s926_s22, %s1151_s22   ;;  %s870_s21 = sphi %s924_s21, %s1150_s21   ;;  %s866_s20 = sphi %s922_s20, %s1149_s20  }
   0x8   : > { %s947_s25 = sadd.s32 1, %s878_s23   ;;  %s29_s26 = sadd.s32 1, %s874_s22 }
   0x9   : > { %s26_s27 = ssub.s32 %s878_s23, %s947_s25  ;;  %p36_p0 = scmp.ne.s32.totalorder %s874_s22, %s870_s21 }
   0xa   : > { %p27_p1 = scmp.eq.s32.totalorder %s26_s27, 0  ;;  %p37_p2 = scmp.eq.s32.totalorder %s878_s23, 0 }
   0xb   : > { %p42_p3 = scmp.ne.s32.totalorder %s870_s21, %s866_s20  ;;  %p43_p4 = scmp.eq.s32.totalorder %s943_s4, 0 }
   0xc   : > { %s959_s28 = scalar_select %p27_p1, %s874_s22, %s29_s26  }
   0xd   : > { %p961_p5 = por %p37_p2, %p36_p0  ;;  %p965_p6 = por %p43_p4, %p42_p3 }
   0xe   : > { %p150_p7 = scmp.eq.s32.totalorder %s943_s4, 1  ;;  %p156_p8 = scmp.eq.s32.totalorder %s667_s24, 1 }
   0xf   : > { %p733_p10 = scmp.lt.s32.totalorder %s878_s23, 2  ;;  %s188_s8 = sand.u32 1, %s874_s22  }
  0x10   : > { %p972_p11 = por %p150_p7, %p36_p0  ;;  %p976_p12 = por %p156_p8, %p42_p3 }
  0x11   : > { %s689_s9 = sshll.u32 %s878_s23, 9  ;;  %s670_s10 = sshll.u32 %s188_s8, 5 }
  0x12   : > { %s1143_s6 = scalar_select %p972_p11, 1, 0 }
  0x13   : > { %s1144_s7 = scalar_select %p976_p12, 1, 0 }
  0x14   : > { %s985_s13 = scalar_lea.hbm %s1134_s0, %s689_s9  ;;  %s192_s14 = scalar_lea.vmem [#allocation3], %s670_s10 }
  0x15   : > { %s199_s15 = sshll.u32 %s192_s14, 4  ;;  %p989_p13 = pnand %p733_p10, %p961_p5  ;;  %s993_s15 = int_to_ptr.vmem [resolvable:$true] %s199_s15 }
  0x16   : > { %s995_s17 = scalar_lea.sflag [#allocation4], %s188_s8  ;;  %s782_s18 = scalar_lea.hbm %s985_s13, 512 }
  0x17   : > { %p783_p0 = scmp.ne.s32.totalorder %s985_s13, %s782_s18  ;;  %p784_p1 = pneg %p989_p13 }
  0x18   : > { %s787_s26 = scalar_lea.hbm %s1134_s0, 1024  ;;  %p788_p4 = scmp.lt.u32.totalorder %s985_s13, %s1134_s0 }
  0x19   : > { %p785_p2 = pnand %p784_p1, %p783_p0  ;;  %p789_p5 = scmp.lt.u32.totalorder %s787_s26, %s782_s18 }
  0x1a   : > { %p791_p8 = scmp.lt.u32.totalorder %s782_s18, %s985_s13 }
  0x1b   : > { %p786_p3 = pneg %p785_p2  ;;  %p790_p7 = por %p789_p5, %p788_p4 }
  0x1d   : > { %p792_p10 = por %p791_p8, %p790_p7 }
  0x1f   : > { %p793_p9 = pnand %p792_p10, %p786_p3 }
  0x21   : > { %796 = shalt.err (!%p793_p9)
}
  0x22   : > { %s797_s8 = scalar_lea.vmem %s993_s15, 512  ;;  %s880_s9 = smov [#allocation3]  }
  0x23   : > { %p798_p0 = scmp.ne.s32.totalorder %s993_s15, %s797_s8  ;;  %s802_s10 = sshll.u32 %s880_s9, 4  ;;  %s803_s10 = int_to_ptr.vmem [resolvable:$false] %s802_s10 }
  0x24   : > { %s804_s11 = scalar_lea.vmem %s803_s10, 1024  ;;  %p805_p11 = scmp.lt.s32.totalorder %s993_s15, %s803_s10 }
  0x25   : > { %p800_p2 = pnand %p798_p0, %p784_p1  ;;  %p806_p4 = scmp.lt.s32.totalorder %s804_s11, %s797_s8 }
  0x27   : > { %p801_p12 = pneg %p800_p2  ;;  %p807_p5 = por %p806_p4, %p805_p11 }
  0x29   : > { %p808_p7 = pnand %p807_p5, %p801_p12 }
  0x2b   : > { %811 = shalt.err (!%p808_p7)
}
  0x2c   : > { %s881_s12 = smov 256   ;;  %s882_s14 = smov 16  }
  0x2d   : > { %728 = dma.hbm_to_vmem [thread:$0]  (!%p989_p13), %s985_s13, 512, %s993_s15, %s995_s17, %s881_s12, %s881_s12, %s882_s14  }
  0x2e   : > { %p673_p9 = scmp.ge.s32.totalorder %s878_s23, 1  ;;  %p207_p1 = scmp.lt.s32.totalorder %s878_s23, 3 }
  0x30   : > { %p208_p3 = pnand %p673_p9, %p207_p1 }
  0x31   : > { %s1026_s18 = sand.u32 (!%p208_p3), 1, %s870_s21  }
  0x32   : > { %211 = sbr.rel (%p208_p3) target bundleno = 832 (0x340), region = 40  ;;  %s674_s19 = sshll.u32 (!%p208_p3), %s1026_s18, 5 }
  0x33   : > { %s214_s24 = scalar_lea.sflag (!%p208_p3), [#allocation4], %s1026_s18  ;;  %s217_s26 = scalar_lea.vmem (!%p208_p3), [#allocation3], %s674_s19 }
  0x39   : > { %857 = dma.done.wait (%p965_p6), %s214_s24, 512  }
  0x3a   : > { %859 = vsyncadd (%p965_p6), %s214_s24, 4294966784  ;;  %v1036_v0 = vld [vmem:[%s217_s26] sm:$0xff]  ;;  %v1038_v1 = vld [vmem:[%s217_s26 + $0x8] sm:$0xff]  ;;  %vm307_vm0 = vcmask 130048   ;;  %v883_v13 = vmov 0.0   ;;  %vm884_vm1 = vmmov 0   ;;  %v294_v32 = vlaneseq }
  0x3b   : > { %v1040_v2 = vld [vmem:[%s217_s26 + $0x10] sm:$0xff]  ;;  %v248_v3 = vadd.f32 %v1038_v1, %v1036_v0  ;;  %v254_v4 = vmul.f32 %v1036_v0, %v1036_v0  ;;  %v255_v5 = vmul.f32 %v1038_v1, %v1038_v1  ;;  %v1048_v6 = vld [vmem:[%s217_s26 + $0x18] sm:$0xff]  ;;  %v291_v12 = vld [vmem:[%s1136_s2] sm:$0x3]  ;;  %698 = vmatprep.subr.mxu0 %v883_v13  ;;  %700 = vmatprep.mubr.msk.f32.mxu0 %vm884_vm1, %v883_v13  ;;  %vm472_vm2 = vcmask 15360   ;;  %s558_s9 = sld [smem:[#allocation2]] }
  0x3c   : > { %v256_v7 = vmul.f32 %v1040_v2, %v1040_v2  ;;  %v257_v8 = vmul.f32 %v1048_v6, %v1048_v6  ;;  %v251_v10 = vadd.f32 %v1048_v6, %v1040_v2  ;;  %699 = vmatpush3.xpose.msk.msra.mxu0 %vm307_vm0, %v291_v12  ;;  %712 = vmatprep.mubr.msk.f32.mxu1 %vm884_vm1, %v883_v13  ;;  %v470_v14 = vld [vmem:[%s1137_s3] sm:$0xff]  ;;  %v471_v15 = vld [vmem:[%s1137_s3 + $0x8] sm:$0xff]  ;;  %v885_v16 = vmov 0.0|0.0   ;;  %vm717_vm3 = vmpackc.low %vm472_vm2, %vm472_vm2  ;;  %s243_s10 = scalar_lea.vmem [#allocation6], %s674_s19  ;;  %s690_s12 = sshll.u32 %s943_s4, 9 }
  0x3d   : > { %249 = vadd.xlane.f32.xlu0 %v248_v3  ;;  %v258_v9 = vadd.f32 %v255_v5, %v254_v4  ;;  %703 = vmatprep.subr.mxu0 %v883_v13  ;;  %v716_v17 = vpack.c.bf16 %v471_v15, %v470_v14  ;;  %v295_v34 = vand.u32 127, %v294_v32  ;;  %v297_v36 = vshrl.u32 %v294_v32, 7  ;;  %v290_v50 = vld [vmem:[%s1135_s1] sm:$0x3]  ;;  %s594_s11 = sshll.u32 %s243_s10, 4  ;;  %s1086_s26 = scalar_lea.hbm %s1139_s5, %s690_s12  ;;  %s1081_s11 = int_to_ptr.vmem [resolvable:$true] %s594_s11 }
  0x3e   : > { %v261_v11 = vadd.f32 %v257_v8, %v256_v7  ;;  %715 = vmatprep.subr.bf16.mxu1 %v885_v16  ;;  %vm305_vm8 = vcmask 130112   ;;  %s581_s4 = scalar_lea.sflag [#allocation5], %s1026_s18  ;;  %s812_s19 = scalar_lea.vmem %s1081_s11, 512 }
  0x3f   : > { %259 = vadd.xlane.f32.xlu1 %v258_v9  ;;  %718 = vmatpush3.bf16.xpose.msk.msra.mxu1 %vm717_vm3, %v716_v17  ;;  %v300_v37 = vadd.s32 4294967288, %v295_v34  ;;  %v298_v44 = vsub.s32 %v295_v34, %v297_v36  ;;  %v563_v3 = vsub.s32 0, %v297_v36  ;;  %p813_p6 = scmp.ne.s32.totalorder %s1081_s11, %s812_s19  ;;  %p1146_p11 = scmp.ne.s32.totalorder %s1143_s6, 0 }
  0x40   : > { %s886_s30 = smov [#allocation6]  }
  0x41   : > { %252 = vadd.xlane.f32.xlu0 %v251_v10  ;;  %v303_v45 = vsub.s32 %v300_v37, %v297_v36  ;;  %v559_v63 = vstv %s558_s9  ;;  %p814_p12 = pnand %p813_p6, %p1146_p11  ;;  %s816_s13 = sshll.u32 %s886_s30, 4  ;;  %s817_s13 = int_to_ptr.vmem [resolvable:$false] %s816_s13 }
  0x42   : > { %s818_s15 = scalar_lea.vmem %s817_s13, 1024  ;;  %p819_p8 = scmp.lt.s32.totalorder %s1081_s11, %s817_s13 }
  0x43   : > { %262 = vadd.xlane.f32.xlu1 %v261_v11  ;;  %p815_p13 = pneg %p814_p12  ;;  %p820_p10 = scmp.lt.s32.totalorder %s818_s15, %s812_s19 }
  0x45   : > { %p821_p0 = por %p820_p10, %p819_p8 }
  0x47   : > { %p822_p2 = pnand %p821_p0, %p815_p13 }
  0xca   : > { %v250_v18 = vpop.xlane.xlu0 %249 }
  0xcb   : > { %v265_v19 = vmul.f32 0.00390625, %v250_v18 }
  0xcc   : > { %v260_v20 = vpop.xlane.xlu1 %259 }
  0xcd   : > { %v267_v21 = vmul.f32 %v265_v19, %v250_v18  ;;  %v388_v53 = vrot.slane %v265_v19, %v298_v44 }
  0xce   : > { %v253_v22 = vpop.xlane.xlu0 %252 }
  0xcf   : > { %v269_v23 = vsub.f32 %v260_v20, %v267_v21  ;;  %v266_v24 = vmul.f32 0.00390625, %v253_v22 }
  0xd0   : > { %v263_v25 = vpop.xlane.xlu1 %262 }
  0xd1   : > { %v271_v26 = vmax.f32 %v269_v23, 0.0  ;;  %v268_v27 = vmul.f32 %v266_v24, %v253_v22  ;;  %v392_v52 = vrot.slane %v266_v24, %v303_v45 }
  0xd3   : > { %v274_v28 = vmul.f32 0.003921569, %v271_v26  ;;  %v270_v29 = vsub.f32 %v263_v25, %v268_v27  ;;  %v393_v54 = vsel %vm305_vm8, %v392_v52, %v388_v53 }
  0xd5   : > { %774 = vrsqrt.f32 %v274_v28  ;;  %v272_v30 = vmax.f32 %v270_v29, 0.0  ;;  %vm278_vm4 = vcmp.eq.f32.partialorder %v274_v28, inf  ;;  %v281_v40 = vand.u32 2147483648, %v274_v28 }
  0xd6   : > { %vm280_vm5 = vcmp.eq.f32.partialorder %v274_v28, 0.0 }
  0xd7   : > { %v275_v31 = vmul.f32 0.003921569, %v272_v30 }
  0xd9   : > { %776 = vrsqrt.f32 %v275_v31  ;;  %vm285_vm6 = vcmp.eq.f32.partialorder %v275_v31, inf  ;;  %v288_v43 = vand.u32 2147483648, %v275_v31  ;;  %vm287_vm7 = vcmp.eq.f32.partialorder %v275_v31, 0.0 }
  0xdf   : > { %v775_v33 = vpop.eup %774 }
  0xe0   : > { %v277_v35 = vmul.f32 %v775_v33, %v274_v28 }
  0xe2   : > { %v279_v38 = vsel %vm278_vm4, %v274_v28, %v277_v35 }
  0xe3   : > { %v777_v39 = vpop.eup %776  ;;  %v282_v42 = vsel %vm280_vm5, %v281_v40, %v279_v38 }
  0xe4   : > { %v284_v41 = vmul.f32 %v777_v39, %v275_v31  ;;  %v299_v48 = vrot.slane %v282_v42, %v298_v44 }
  0xe6   : > { %v286_v46 = vsel %vm285_vm6, %v275_v31, %v284_v41 }
  0xe7   : > { %v289_v47 = vsel %vm287_vm7, %v288_v43, %v286_v46 }
  0xe8   : > { %v304_v49 = vrot.slane %v289_v47, %v303_v45 }
  0xea   : > { %v306_v51 = vsel %vm305_vm8, %v304_v49, %v299_v48 }
  0xeb   : > { %701 = vmatmul.mubr.msk.f32.vlgmr.msra.gmra.mrb[0].mxu0 %vm307_vm0, %v306_v51 }
  0xec   : > { %704 = vmatpush3.xpose.msk.msra.mxu0 %vm307_vm0, %v290_v50  ;;  %705 = vmatprep.mubr.msk.f32.mxu0 %vm884_vm1, %v883_v13 }
  0xf3   : > { %706 = vmatmul.mubr.msk.f32.vlgmr.msra.gmra.mrb[0].mxu0 %vm307_vm0, %v393_v54 }
 0x1c6   : > { %v465_v55 = vpop.f32.mrb[0].mxu0 }
 0x1c7   : > { %v469_v56 = vmax.f32 %v465_v55, 0.0  ;;  %v707_v57 = vpop.f32.mrb[1].mxu0 }
 0x1c9   : > { %713 = vmatmul.mubr.msk.f32.vlgmr.msra.gmra.mrb[0].mxu1 %vm472_vm2, %v469_v56 }
 0x29c   : > { %v548_v58 = vpop.f32.mrb[0].mxu1 }
 0x29d   : > { %v683_v59 = vmul.f32 -1.442695, %v548_v58  ;;  %v714_v60 = vpop.f32.mrb[1].mxu1 }
 0x29f   : > { %778 = vpow2.f32 %v683_v59 }
 0x2a9   : > { %v779_v61 = vpop.eup %778 }
 0x2aa   : > { %v555_v62 = vadd.f32 1.0, %v779_v61 }
 0x2ac   : > { %780 = vrcp.f32 %v555_v62 }
 0x2b6   : > { %v781_v4 = vpop.eup %780 }
 0x2b7   : > { %v560_v5 = vmul.f32 %v781_v4, %v559_v63 }
 0x2b9   : > { %v564_v7 = vrot.slane %v560_v5, %v563_v3 }
 0x2bb   : > { %570 = vbcast.lane.b32.xlu1 %v564_v7, 264  ;;  %566 = vbcast.lane.b32.xlu0 %v564_v7, 256 }
 0x32d   : > { %v571_v8 = vpop.permute.xlu1 %570  ;;  %v567_v9 = vpop.permute.xlu0 %566 }
 0x32e   : > { %v574_v10 = vmul.f32 %v571_v8, %v1040_v2  ;;  %v575_v11 = vmul.f32 %v571_v8, %v1048_v6  ;;  %v572_v12 = vmul.f32 %v567_v9, %v1036_v0  ;;  %v573_v13 = vmul.f32 %v567_v9, %v1038_v1 }
 0x330   : > { %578 = vst [vmem:[%s243_s10 + $0x10] sm:$0xff] %v574_v10  ;;  %579 = vst [vmem:[%s243_s10 + $0x18] sm:$0xff] %v575_v11 }
 0x331   : > { %576 = vst [vmem:[%s243_s10] sm:$0xff] %v572_v12  ;;  %577 = vst [vmem:[%s243_s10 + $0x8] sm:$0xff] %v573_v13 }
 0x332   : > { %825 = shalt.err (!%p822_p2)
}
 0x333   : > { %s826_s16 = scalar_lea.hbm %s1086_s26, 512  ;;  %s830_s29 = scalar_lea.hbm %s1139_s5, 1024 }
 0x334   : > { %p827_p4 = scmp.ne.s32.totalorder %s1086_s26, %s826_s16  ;;  %p831_p9 = scmp.lt.u32.totalorder %s1086_s26, %s1139_s5 }
 0x335   : > { %p832_p1 = scmp.lt.u32.totalorder %s830_s29, %s826_s16  ;;  %p834_p6 = scmp.lt.u32.totalorder %s826_s16, %s1086_s26 }
 0x336   : > { %p828_p5 = pnand %p827_p4, %p1146_p11 }
 0x337   : > { %p833_p3 = por %p832_p1, %p831_p9 }
 0x338   : > { %p829_p7 = pneg %p828_p5 }
 0x339   : > { %p835_p12 = por %p834_p6, %p833_p3 }
 0x33b   : > { %p836_p13 = pnand %p835_p12, %p829_p7 }
 0x33d   : > { %839 = shalt.err (!%p836_p13)
}
 0x33e   : > { %s887_s10 = smov 256   ;;  %s888_s12 = smov 16  }
 0x33f   : > { %723 = dma.vmem_to_hbm [thread:$0]  (%p1146_p11), %s1081_s11, 512, %s1086_s26, %s581_s4, %s887_s10, %s887_s10, %s888_s12  }
 0x340 PF: > { %s609_s14 = sand.u32 1, %s866_s20   ;;  %p1147_p8 = scmp.ne.s32.totalorder %s1144_s7, 0 }
 0x341   : > { %p1148_p10 = scmp.ge.s32.totalorder %s878_s23, 2  ;;  %s610_s24 = scalar_lea.sflag [#allocation5], %s609_s14 }
 0x343   : > { %p730_p0 = pnand %p1148_p10, %p1147_p8 }
 0x345   : > { %861 = dma.done.wait (!%p730_p0), %s610_s24, 512  }
 0x346   : > { %863 = vsyncadd (!%p730_p0), %s610_s24, 4294966784  ;;  %p19_p2 = scmp.ge.s32.totalorder %s947_s25, 4   ;;  %s1149_s20 = smov %s870_s21 }
 0x347   : > { %s1150_s21 = smov %s874_s22  ;;  %s1151_s22 = smov %s959_s28 }
 0x348   : > { %s1152_s23 = smov %s947_s25  ;;  %21 = sbr.rel (!%p19_p2) target bundleno = 7 (0x7), region = 85 }
 0x34f   :  { %615 = vsyncpa [#allocation4], 1 }
 0x350   :  { %617 = vsyncpa [#allocation4 + $0x1], 1 }
 0x351   :  { %618 = vsyncpa [#allocation5], 1 }
 0x352   :  { %620 = vsyncpa [#allocation5 + $0x1], 1 }

</bundles_post_ra>
